<compile_context>
chip_gen: v6e
topology: v6e:2x2x1
jax: 0.10.0
libtpu: 0.0.40
codegen_flags: <defaults>
</compile_context>

<pallas_src>
import jax
import jax.numpy as jnp
from jax.experimental import pallas as pl
from jax.experimental.pallas import tpu as pltpu


# ----------------------------------------------------------------------------
# Fused Pallas kernel
# ----------------------------------------------------------------------------
def _make_controler_kernel(n_hidden, C, D):
    """Fused controller: (depth+1) matmuls + ReLUs + cross-plane softmax, all in VMEM."""

    def kernel(*refs):
        if n_hidden > 0:
            x_ref, w0_ref, b0_ref, wh_ref, bh_ref, wf_ref, bf_ref, out_ref = refs
        else:
            x_ref, w0_ref, b0_ref, wf_ref, bf_ref, out_ref = refs

        # Layer 0: per-group weights concatenated along output channels (D -> C*I).
        # bf16 MXU operands, f32 accumulation; elementwise math in f32.
        h = jnp.dot(x_ref[...].astype(jnp.bfloat16), w0_ref[...],
                    preferred_element_type=jnp.float32)
        h = jnp.maximum(h + b0_ref[...], 0.0)

        # Hidden layers: block-diagonal grouped weights (C*I -> C*I), fully unrolled.
        for l in range(n_hidden):
            h = jnp.dot(h.astype(jnp.bfloat16), wh_ref[l],
                        preferred_element_type=jnp.float32)
            h = jnp.maximum(h + bh_ref[l], 0.0)

        # Final layer: block-diagonal + output-channel permutation -> C contiguous
        # lane-dense planes; plane j, lane i == flat channel i*C + j.
        pf = jnp.dot(h.astype(jnp.bfloat16), wf_ref[...],
                     preferred_element_type=jnp.float32) + bf_ref[...]

        # Softmax over the controller axis (dim=2 of flat.view(B, -1, C)) ==
        # elementwise softmax across the C planes.  Per-position max/sum via plane
        # slices, a single full-tile exp, exact f32 normalization (rows sum to 1 to
        # f32 rounding), one dense (BM, C*D) store.
        m = pf[:, 0:D]
        for j in range(1, C):
            m = jnp.maximum(m, pf[:, j * D:(j + 1) * D])
        e = jnp.exp(pf - jnp.concatenate([m] * C, axis=1))
        s = e[:, 0:D]
        for j in range(1, C):
            s = s + e[:, j * D:(j + 1) * D]
        out_ref[...] = e / jnp.concatenate([s] * C, axis=1)

    return kernel


def parallel_controler_forward(params, x):
    """Fused Parallel_Controler forward.  Returns (B, input_dim, controler_size)."""
    x = jnp.asarray(x, jnp.float32)
    B, D = x.shape
    CI = params["w0"].shape[1]
    CD = params["wf"].shape[1]
    C = CD // D
    n_hidden = params["wh"].shape[0] if "wh" in params else 0

    # --- batch tiling -------------------------------------------------------
    # Small B: one grid step (per-step overhead ~0.35us would dominate otherwise).
    # Large B: 256-multiple tiles (MXU-height friendly on v5e/v6e/v7x), capped at 2048,
    # sized so v7x's two TCs each get a "parallel" step; ragged tail is zero-padded.
    if B < 512:
        BM = B
    else:
        BM = min(2048, 256 * pl.cdiv(B, 512))
    B_pad = pl.cdiv(B, BM) * BM
    if B_pad != B:
        x = jnp.pad(x, ((0, B_pad - B), (0, 0)))
    grid = (B_pad // BM,)

    kernel = _make_controler_kernel(n_hidden, C, D)

    in_specs = [
        pl.BlockSpec((BM, D), lambda i: (i, 0)),           # x tile
        pl.BlockSpec((D, CI), lambda i: (0, 0)),           # layer-0 packed weights (bf16)
        pl.BlockSpec((1, CI), lambda i: (0, 0)),           # layer-0 packed bias (f32)
    ]
    args = [x, params["w0"], params["b0"]]
    if n_hidden > 0:
        in_specs += [
            pl.BlockSpec((n_hidden, CI, CI), lambda i: (0, 0, 0)),   # block-diag hidden W (bf16)
            pl.BlockSpec((n_hidden, 1, CI), lambda i: (0, 0, 0)),    # hidden biases (f32)
        ]
        args += [params["wh"], params["bh"]]
    in_specs += [
        pl.BlockSpec((CI, CD), lambda i: (0, 0)),          # final block-diag + permuted W (bf16)
        pl.BlockSpec((1, CD), lambda i: (0, 0)),           # final permuted bias (f32)
    ]
    args += [params["wf"], params["bf"]]

    # --- VMEM budget + cost hint -------------------------------------------
    w_bytes = sum(int(a.size) * jnp.dtype(a.dtype).itemsize for a in args[1:])
    tile_bytes = 2 * BM * D * 4 + 2 * BM * CD * 4            # double-buffered x / out tiles
    act_bytes = 8 * BM * CI * 4 + 6 * BM * CD * 4            # h (+bf16 copy), pf, softmax temps
    vmem_limit = int(min(max(2 * w_bytes + tile_bytes + act_bytes + (2 << 20), 8 << 20),
                         48 << 20))                           # stay well under v7x's 64 MiB

    flops = 2 * B_pad * (D * CI + n_hidden * CI * CI + CI * CD) + 6 * B_pad * CD
    cost = pl.CostEstimate(flops=int(flops),
                           transcendentals=int(B_pad * CD),
                           bytes_accessed=int(B_pad * D * 4 + w_bytes + B_pad * CD * 4))

    out2d = pl.pallas_call(
        kernel,
        out_shape=jax.ShapeDtypeStruct((B_pad, CD), jnp.float32),
        grid=grid,
        in_specs=in_specs,
        out_specs=pl.BlockSpec((BM, CD), lambda i: (i, 0)),
        compiler_params=pltpu.CompilerParams(
            dimension_semantics=("parallel",),
            vmem_limit_bytes=vmem_limit),
        cost_estimate=cost,
    )(*args)

    if B_pad != B:
        out2d = out2d[:B]

    # Lane-dense (B, C*D) plane slab -> PyTorch channel-minor layout (B, D, C).
    return out2d.reshape(B, C, D).transpose(0, 2, 1)


# ----------------------------------------------------------------------------
# Parameter construction (plain JAX glue, done once)
# ----------------------------------------------------------------------------
def _uinit(key, shape, fan_in):
    bound = 1.0 / float(fan_in) ** 0.5
    return jax.random.uniform(key, shape, jnp.float32, -bound, bound)


def init_group_params(key, D, I, C, depth):
    """Per-group (in, out)-oriented Conv1d(k=1) weights, PyTorch-like init."""
    groups = []
    for _ in range(C):
        key, k = jax.random.split(key)
        ks = jax.random.split(k, 2 * (depth + 1))
        layers, in_dim = [], D
        for l in range(depth):
            layers.append((_uinit(ks[2 * l], (in_dim, I), in_dim),
                           _uinit(ks[2 * l + 1], (I,), in_dim)))
            in_dim = I
        final = (_uinit(ks[2 * depth], (I, D), I),
                 _uinit(ks[2 * depth + 1], (D,), I))
        groups.append(dict(layers=layers, final=final))
    return groups


def pack_params(groups, D, I, C, depth):
    """Pack per-group weights into the fused layouts consumed by the kernel.

    Matmul weights are stored bf16 (full-rate MXU, half the weight DMA); biases stay f32.
    """
    n_hidden = depth - 1
    w0 = jnp.concatenate([g["layers"][0][0] for g in groups], axis=1)          # (D, C*I)
    b0 = jnp.concatenate([g["layers"][0][1] for g in groups]).reshape(1, C * I)
    params = dict(w0=w0.astype(jnp.bfloat16), b0=b0)

    if n_hidden > 0:
        wh, bh = [], []
        for l in range(1, depth):
            blk = jnp.zeros((C * I, C * I), jnp.float32)
            for g in range(C):
                blk = blk.at[g * I:(g + 1) * I, g * I:(g + 1) * I].set(
                    groups[g]["layers"][l][0])
            wh.append(blk)
            bh.append(jnp.concatenate(
                [groups[g]["layers"][l][1] for g in range(C)]).reshape(1, C * I))
        params["wh"] = jnp.stack(wh).astype(jnp.bfloat16)   # (depth-1, C*I, C*I)
        params["bh"] = jnp.stack(bh)                        # (depth-1, 1, C*I)

    # Final layer: block-diagonal (C*I, C*D), then permute output channels so that
    # flat channel k = i*C + j lands at position j*D + i (C contiguous softmax planes).
    wf_big = jnp.zeros((C * I, C * D), jnp.float32)
    bf_big = jnp.zeros((C * D,), jnp.float32)
    for g in range(C):
        wf_big = wf_big.at[g * I:(g + 1) * I, g * D:(g + 1) * D].set(groups[g]["final"][0])
        bf_big = bf_big.at[g * D:(g + 1) * D].set(groups[g]["final"][1])
    ii = jnp.arange(D)
    jj = jnp.arange(C)
    perm = (ii[None, :] * C + jj[:, None]).reshape(C * D)   # perm[j*D + i] = i*C + j
    params["wf"] = wf_big[:, perm].astype(jnp.bfloat16)
    params["bf"] = bf_big[perm].reshape(1, C * D)
    return params


# ----------------------------------------------------------------------------
# Pure-JAX reference (mirrors the PyTorch module exactly, f32)
# ----------------------------------------------------------------------------
def reference_forward(groups, x):
    B, D = x.shape
    C = len(groups)
    outs = []
    for g in groups:
        h = x
        for (w, b) in g["layers"]:
            h = jnp.maximum(jnp.dot(h, w, precision=jax.lax.Precision.HIGHEST) + b, 0.0)
        wf, bf = g["final"]
        outs.append(jnp.dot(h, wf, precision=jax.lax.Precision.HIGHEST) + bf)
    flat = jnp.concatenate(outs, axis=1)           # grouped-conv channel order (B, C*D)
    return jax.nn.softmax(flat.reshape(B, D, C), axis=2)   # == torch .view(B,-1,C)+softmax(dim=2)


# ----------------------------------------------------------------------------
if __name__ == "__main__":
    # Small shapes consistent with the module (class defaults controler_size=3, depth=4).
    B, D, I, C, depth = 16, 16, 32, 3, 4

    key = jax.random.PRNGKey(0)
    k_param, k_x = jax.random.split(key)
    groups = init_group_params(k_param, D, I, C, depth)
    params = pack_params(groups, D, I, C, depth)
    x = jax.random.normal(k_x, (B, D), jnp.float32)

    fwd = jax.jit(parallel_controler_forward)
    out = fwd(params, x)
    jax.block_until_ready(out)

    assert out.shape == (B, D, C), out.shape
    assert bool(jnp.all(jnp.isfinite(out)))
    # softmax over the controller axis must sum to 1 (exact f32 normalization now)
    assert bool(jnp.allclose(jnp.sum(out, axis=2), 1.0, atol=1e-3))
    # match the PyTorch-equivalent f32 reference (bf16 MXU inputs -> modest tolerance)
    ref = reference_forward(groups, x)
    assert bool(jnp.allclose(out, ref, atol=2e-2, rtol=2e-2)), \
        float(jnp.max(jnp.abs(out - ref)))
    print("KERNEL_OK")
</pallas_src>

<mosaic_0001>
module attributes {stable_mosaic.version = 11 : i64} {
  func.func @kernel(%arg0: i32, %arg1: memref<16x16xf32, #tpu.memory_space<vmem>>, %arg2: memref<16x96xbf16, #tpu.memory_space<vmem>>, %arg3: memref<1x96xf32, #tpu.memory_space<vmem>>, %arg4: memref<3x96x96xbf16, #tpu.memory_space<vmem>>, %arg5: memref<3x1x96xf32, #tpu.memory_space<vmem>>, %arg6: memref<96x48xbf16, #tpu.memory_space<vmem>>, %arg7: memref<1x48xf32, #tpu.memory_space<vmem>>, %arg8: memref<16x48xf32, #tpu.memory_space<vmem>>) attributes {dimension_semantics = [#tpu.dimension_semantics<parallel>], iteration_bounds = array<i64: 1>, scalar_prefetch = 0 : i64, scratch_operands = 0 : i64, tpu.core_type = #tpu.core_type<tc>, window_params = [{transform_indices = @transform_0, window_bounds = array<i64: 16, 16>}, {pipeline_mode = #tpu.pipeline_mode<synchronous>, transform_indices = @transform_1, window_bounds = array<i64: 16, 96>}, {pipeline_mode = #tpu.pipeline_mode<synchronous>, transform_indices = @transform_2, window_bounds = array<i64: 1, 96>}, {pipeline_mode = #tpu.pipeline_mode<synchronous>, transform_indices = @transform_3, window_bounds = array<i64: 3, 96, 96>}, {pipeline_mode = #tpu.pipeline_mode<synchronous>, transform_indices = @transform_4, window_bounds = array<i64: 3, 1, 96>}, {pipeline_mode = #tpu.pipeline_mode<synchronous>, transform_indices = @transform_5, window_bounds = array<i64: 96, 48>}, {pipeline_mode = #tpu.pipeline_mode<synchronous>, transform_indices = @transform_6, window_bounds = array<i64: 1, 48>}, {transform_indices = @transform_7, window_bounds = array<i64: 16, 48>}]} {
    %c0 = arith.constant 0 : index
    %c0_0 = arith.constant 0 : index
    %0 = vector.load %arg1[%c0, %c0_0] : memref<16x16xf32, #tpu.memory_space<vmem>>, vector<16x16xf32>
    %1 = arith.truncf %0 : vector<16x16xf32> to vector<16x16xbf16>
    %c0_1 = arith.constant 0 : index
    %c0_2 = arith.constant 0 : index
    %2 = vector.load %arg2[%c0_1, %c0_2] : memref<16x96xbf16, #tpu.memory_space<vmem>>, vector<16x96xbf16>
    %cst = arith.constant dense<0.000000e+00> : vector<16x96xf32>
    %3 = tpu.matmul %1, %2, %cst {dimension_numbers = #tpu.dot_dimension_numbers<[1], [0], [0], [1], [0, 0, 1, 1], [], []>} : vector<16x16xbf16>, vector<16x96xbf16>, vector<16x96xf32> -> vector<16x96xf32>
    %c0_3 = arith.constant 0 : index
    %c0_4 = arith.constant 0 : index
    %4 = vector.load %arg3[%c0_3, %c0_4] : memref<1x96xf32, #tpu.memory_space<vmem>>, vector<1x96xf32>
    %5 = vector.broadcast %4 : vector<1x96xf32> to vector<16x96xf32>
    %6 = arith.addf %3, %5 : vector<16x96xf32>
    %cst_5 = arith.constant 0.000000e+00 : f32
    %7 = vector.broadcast %cst_5 : f32 to vector<16x96xf32>
    %8 = arith.maximumf %6, %7 : vector<16x96xf32>
    %9 = arith.truncf %8 : vector<16x96xf32> to vector<16x96xbf16>
    %c0_6 = arith.constant 0 : index
    %c0_7 = arith.constant 0 : index
    %c0_8 = arith.constant 0 : index
    %10 = vector.load %arg4[%c0_6, %c0_7, %c0_8] : memref<3x96x96xbf16, #tpu.memory_space<vmem>>, vector<1x96x96xbf16>
    %11 = vector.shape_cast %10 : vector<1x96x96xbf16> to vector<96x96xbf16>
    %cst_9 = arith.constant dense<0.000000e+00> : vector<16x96xf32>
    %12 = tpu.matmul %9, %11, %cst_9 {dimension_numbers = #tpu.dot_dimension_numbers<[1], [0], [0], [1], [0, 0, 1, 1], [], []>} : vector<16x96xbf16>, vector<96x96xbf16>, vector<16x96xf32> -> vector<16x96xf32>
    %c0_10 = arith.constant 0 : index
    %c0_11 = arith.constant 0 : index
    %c0_12 = arith.constant 0 : index
    %13 = vector.load %arg5[%c0_10, %c0_11, %c0_12] : memref<3x1x96xf32, #tpu.memory_space<vmem>>, vector<1x1x96xf32>
    %14 = vector.shape_cast %13 : vector<1x1x96xf32> to vector<1x96xf32>
    %15 = vector.broadcast %14 : vector<1x96xf32> to vector<16x96xf32>
    %16 = arith.addf %12, %15 : vector<16x96xf32>
    %cst_13 = arith.constant 0.000000e+00 : f32
    %17 = vector.broadcast %cst_13 : f32 to vector<16x96xf32>
    %18 = arith.maximumf %16, %17 : vector<16x96xf32>
    %19 = arith.truncf %18 : vector<16x96xf32> to vector<16x96xbf16>
    %c1 = arith.constant 1 : index
    %c0_14 = arith.constant 0 : index
    %c0_15 = arith.constant 0 : index
    %20 = vector.load %arg4[%c1, %c0_14, %c0_15] : memref<3x96x96xbf16, #tpu.memory_space<vmem>>, vector<1x96x96xbf16>
    %21 = vector.shape_cast %20 : vector<1x96x96xbf16> to vector<96x96xbf16>
    %cst_16 = arith.constant dense<0.000000e+00> : vector<16x96xf32>
    %22 = tpu.matmul %19, %21, %cst_16 {dimension_numbers = #tpu.dot_dimension_numbers<[1], [0], [0], [1], [0, 0, 1, 1], [], []>} : vector<16x96xbf16>, vector<96x96xbf16>, vector<16x96xf32> -> vector<16x96xf32>
    %c1_17 = arith.constant 1 : index
    %c0_18 = arith.constant 0 : index
    %c0_19 = arith.constant 0 : index
    %23 = vector.load %arg5[%c1_17, %c0_18, %c0_19] : memref<3x1x96xf32, #tpu.memory_space<vmem>>, vector<1x1x96xf32>
    %24 = vector.shape_cast %23 : vector<1x1x96xf32> to vector<1x96xf32>
    %25 = vector.broadcast %24 : vector<1x96xf32> to vector<16x96xf32>
    %26 = arith.addf %22, %25 : vector<16x96xf32>
    %cst_20 = arith.constant 0.000000e+00 : f32
    %27 = vector.broadcast %cst_20 : f32 to vector<16x96xf32>
    %28 = arith.maximumf %26, %27 : vector<16x96xf32>
    %29 = arith.truncf %28 : vector<16x96xf32> to vector<16x96xbf16>
    %c2 = arith.constant 2 : index
    %c0_21 = arith.constant 0 : index
    %c0_22 = arith.constant 0 : index
    %30 = vector.load %arg4[%c2, %c0_21, %c0_22] : memref<3x96x96xbf16, #tpu.memory_space<vmem>>, vector<1x96x96xbf16>
    %31 = vector.shape_cast %30 : vector<1x96x96xbf16> to vector<96x96xbf16>
    %cst_23 = arith.constant dense<0.000000e+00> : vector<16x96xf32>
    %32 = tpu.matmul %29, %31, %cst_23 {dimension_numbers = #tpu.dot_dimension_numbers<[1], [0], [0], [1], [0, 0, 1, 1], [], []>} : vector<16x96xbf16>, vector<96x96xbf16>, vector<16x96xf32> -> vector<16x96xf32>
    %c2_24 = arith.constant 2 : index
    %c0_25 = arith.constant 0 : index
    %c0_26 = arith.constant 0 : index
    %33 = vector.load %arg5[%c2_24, %c0_25, %c0_26] : memref<3x1x96xf32, #tpu.memory_space<vmem>>, vector<1x1x96xf32>
    %34 = vector.shape_cast %33 : vector<1x1x96xf32> to vector<1x96xf32>
    %35 = vector.broadcast %34 : vector<1x96xf32> to vector<16x96xf32>
    %36 = arith.addf %32, %35 : vector<16x96xf32>
    %cst_27 = arith.constant 0.000000e+00 : f32
    %37 = vector.broadcast %cst_27 : f32 to vector<16x96xf32>
    %38 = arith.maximumf %36, %37 : vector<16x96xf32>
    %39 = arith.truncf %38 : vector<16x96xf32> to vector<16x96xbf16>
    %c0_28 = arith.constant 0 : index
    %c0_29 = arith.constant 0 : index
    %40 = vector.load %arg6[%c0_28, %c0_29] : memref<96x48xbf16, #tpu.memory_space<vmem>>, vector<96x48xbf16>
    %cst_30 = arith.constant dense<0.000000e+00> : vector<16x48xf32>
    %41 = tpu.matmul %39, %40, %cst_30 {dimension_numbers = #tpu.dot_dimension_numbers<[1], [0], [0], [1], [0, 0, 1, 1], [], []>} : vector<16x96xbf16>, vector<96x48xbf16>, vector<16x48xf32> -> vector<16x48xf32>
    %c0_31 = arith.constant 0 : index
    %c0_32 = arith.constant 0 : index
    %42 = vector.load %arg7[%c0_31, %c0_32] : memref<1x48xf32, #tpu.memory_space<vmem>>, vector<1x48xf32>
    %43 = vector.broadcast %42 : vector<1x48xf32> to vector<16x48xf32>
    %44 = arith.addf %41, %43 : vector<16x48xf32>
    %45 = vector.extract_strided_slice %44 {offsets = [0, 0], sizes = [16, 16], strides = [1, 1]} : vector<16x48xf32> to vector<16x16xf32>
    %46 = vector.extract_strided_slice %44 {offsets = [0, 16], sizes = [16, 16], strides = [1, 1]} : vector<16x48xf32> to vector<16x16xf32>
    %47 = arith.maximumf %45, %46 : vector<16x16xf32>
    %48 = vector.extract_strided_slice %44 {offsets = [0, 32], sizes = [16, 16], strides = [1, 1]} : vector<16x48xf32> to vector<16x16xf32>
    %49 = arith.maximumf %47, %48 : vector<16x16xf32>
    %50 = tpu.concatenate %49, %49, %49 in 1 : vector<16x16xf32>, vector<16x16xf32>, vector<16x16xf32> -> vector<16x48xf32>
    %51 = arith.subf %44, %50 : vector<16x48xf32>
    %52 = math.exp %51 : vector<16x48xf32>
    %53 = vector.extract_strided_slice %52 {offsets = [0, 0], sizes = [16, 16], strides = [1, 1]} : vector<16x48xf32> to vector<16x16xf32>
    %54 = vector.extract_strided_slice %52 {offsets = [0, 16], sizes = [16, 16], strides = [1, 1]} : vector<16x48xf32> to vector<16x16xf32>
    %55 = arith.addf %53, %54 : vector<16x16xf32>
    %56 = vector.extract_strided_slice %52 {offsets = [0, 32], sizes = [16, 16], strides = [1, 1]} : vector<16x48xf32> to vector<16x16xf32>
    %57 = arith.addf %55, %56 : vector<16x16xf32>
    %58 = tpu.concatenate %57, %57, %57 in 1 : vector<16x16xf32>, vector<16x16xf32>, vector<16x16xf32> -> vector<16x48xf32>
    %59 = arith.divf %52, %58 : vector<16x48xf32>
    %c0_33 = arith.constant 0 : index
    %c0_34 = arith.constant 0 : index
    %60 = vector.load %arg8[%c0_33, %c0_34] : memref<16x48xf32, #tpu.memory_space<vmem>>, vector<16x48xf32>
    tpu.vector_store %arg8[%c0_33, %c0_34], %59 {strides = array<i32>} : memref<16x48xf32, #tpu.memory_space<vmem>>, vector<16x48xf32>,
    return
  }
  func.func @transform_0(%arg0: i32) -> (i32, i32) {
    %c0_i32 = arith.constant 0 : i32
    %c0_i32_0 = arith.constant 0 : i32
    return %arg0, %c0_i32 : i32, i32
  }
  func.func @transform_1(%arg0: i32) -> (i32, i32) {
    %c0_i32 = arith.constant 0 : i32
    %c0_i32_0 = arith.constant 0 : i32
    %c0_i32_1 = arith.constant 0 : i32
    return %c0_i32, %c0_i32_0 : i32, i32
  }
  func.func @transform_2(%arg0: i32) -> (i32, i32) {
    %c0_i32 = arith.constant 0 : i32
    %c0_i32_0 = arith.constant 0 : i32
    %c0_i32_1 = arith.constant 0 : i32
    return %c0_i32, %c0_i32_0 : i32, i32
  }
  func.func @transform_3(%arg0: i32) -> (i32, i32, i32) {
    %c0_i32 = arith.constant 0 : i32
    %c0_i32_0 = arith.constant 0 : i32
    %c0_i32_1 = arith.constant 0 : i32
    %c0_i32_2 = arith.constant 0 : i32
    return %c0_i32, %c0_i32_0, %c0_i32_1 : i32, i32, i32
  }
  func.func @transform_4(%arg0: i32) -> (i32, i32, i32) {
    %c0_i32 = arith.constant 0 : i32
    %c0_i32_0 = arith.constant 0 : i32
    %c0_i32_1 = arith.constant 0 : i32
    %c0_i32_2 = arith.constant 0 : i32
    return %c0_i32, %c0_i32_0, %c0_i32_1 : i32, i32, i32
  }
  func.func @transform_5(%arg0: i32) -> (i32, i32) {
    %c0_i32 = arith.constant 0 : i32
    %c0_i32_0 = arith.constant 0 : i32
    %c0_i32_1 = arith.constant 0 : i32
    return %c0_i32, %c0_i32_0 : i32, i32
  }
  func.func @transform_6(%arg0: i32) -> (i32, i32) {
    %c0_i32 = arith.constant 0 : i32
    %c0_i32_0 = arith.constant 0 : i32
    %c0_i32_1 = arith.constant 0 : i32
    return %c0_i32, %c0_i32_0 : i32, i32
  }
  func.func @transform_7(%arg0: i32) -> (i32, i32) {
    %c0_i32 = arith.constant 0 : i32
    %c0_i32_0 = arith.constant 0 : i32
    return %arg0, %c0_i32 : i32, i32
  }
}

</mosaic_0001>

<bundles_post_ra>
// kernel: parallel_controler_forward.1
= control target key start
LH: loop header
LB: loop body
LE: loop exit
PB: predicated region body
PF: predicated region fallthrough
CT: control target
= control target key end

     0   :  { %12 = vsyncpa [#allocation3], 0  ;;  %s809_s24 = smov [#allocation2]   ;;  %s973_s0 = inlined_call_operand.vmem [shape: f32[16,16], index: 0, kind: input, shape index: {}]   ;;  %s974_s1 = inlined_call_operand.vmem [shape: bf16[16,96], index: 1, kind: input, shape index: {}]   ;;  %s975_s2 = inlined_call_operand.vmem [shape: f32[1,96], index: 2, kind: input, shape index: {}]   ;;  %s976_s3 = inlined_call_operand.hbm [shape: bf16[3,96,96], index: 3, kind: input, shape index: {}]   ;;  %s977_s4 = inlined_call_operand.vmem [shape: f32[3,1,96], index: 4, kind: input, shape index: {}]   ;;  %s978_s5 = inlined_call_operand.vmem [shape: bf16[96,48], index: 5, kind: input, shape index: {}]   ;;  %s979_s6 = inlined_call_operand.vmem [shape: f32[1,48], index: 6, kind: input, shape index: {}]   ;;  %s980_s7 = inlined_call_operand.vmem [shape: f32[16,48], index: 7, kind: output, shape index: {}]  }
   0x1   :  { %s24_s25 = sshll.u32 %s809_s24, 4  ;;  %s25_s25 = int_to_ptr.vmem [resolvable:$true] %s24_s25 }
   0x2   :  { %s795_s26 = scalar_lea.vmem %s25_s25, 2304  ;;  %p800_p1 = scmp.lt.s32.totalorder %s25_s25, %s25_s25 }
   0x3   :  { %p796_p0 = scmp.ne.s32.totalorder %s25_s25, %s795_s26  ;;  %p801_p2 = scmp.lt.s32.totalorder %s795_s26, %s795_s26 }
   0x5   :  { %p802_p3 = por %p801_p2, %p800_p1 }
   0x7   :  { %p803_p4 = pnand %p802_p3, %p796_p0 }
   0x9   :  { %806 = shalt.err (!%p803_p4)
}
   0xa   :  { %s810_s27 = smov 64   ;;  %s811_s28 = smov 4  }
   0xb   :  { %30 = dma.hbm_to_vmem [thread:$0]  %s976_s3, 2304, %s25_s25, [#allocation3], %s810_s27, %s810_s27, %s811_s28  }
   0xc   :  { %807 = dma.done.wait [#allocation3], 2304  }
   0xd   :  { %808 = vsyncadd [#allocation3], 4294964992  ;;  %v812_v0 = vmov 0.0   ;;  %vm813_vm0 = vmmov 0   ;;  %v754_v1 = vld [vmem:[%s974_s1] sm:$0xff]   ;;  %v42_v3 = vld [vmem:[%s973_s0 + $0x8] sm:$0xff] }
   0xe   :  { %675 = vmatprep.subr.bf16.mxu0 %v812_v0  ;;  %677 = vmatprep.mubr.msk.bf16.mxu0 %vm813_vm0, %v812_v0  ;;  %v41_v2 = vld [vmem:[%s973_s0] sm:$0xff]  ;;  %vm59_vm1 = vcmask 130048   ;;  %v755_v5 = vld [vmem:[#allocation2 + $0x28] sm:$0xff]   ;;  %v757_v7 = vld [vmem:[#allocation2 + $0x18] sm:$0xff]   ;;  %vm162_vm2 = vcmask 785408   ;;  %s817_s9 = smov 32  }
   0xf   :  { %681 = vmatprep.subr.bf16.mxu1 %v812_v0  ;;  %693 = vmatprep.mubr.msk.bf16.mxu1 %vm813_vm0, %v812_v0  ;;  %v43_v4 = vpack.c.bf16 %v42_v3, %v41_v2  ;;  %v756_v6 = vld [vmem:[#allocation2 + $0x20] sm:$0xff]   ;;  %v758_v8 = vld [vmem:[#allocation2 + $0x10] sm:$0xff]   ;;  %v759_v9 = vld [vmem:[#allocation2 + $0x8] sm:$0xff]   ;;  %vm551_vm3 = vcmask 261120   ;;  %vm600_vm4 = vcmask 392192  }
  0x10   :  { %676 = vmatpush3.bf16.msra.mxu0 %v754_v1  ;;  %682 = vmatpush3.bf16.msra.mxu1 %v755_v5  ;;  %v760_v10 = vld [vmem:[#allocation2] sm:$0xff]   ;;  %v761_v11 = vld [vmem:[#allocation2 + $0x58] sm:$0xff]   ;;  %v762_v12 = vld [vmem:[#allocation2 + $0x50] sm:$0xff]  }
  0x11   :  { %697 = vmatprep.subr.bf16.mxu0 %v812_v0  ;;  %683 = vmatprep.subr.bf16.mxu1 %v812_v0  ;;  %v763_v13 = vld [vmem:[#allocation2 + $0x48] sm:$0xff]   ;;  %v608_v14 = vld [vmem:[%s975_s2] ss:$0 sm:$0xff]  ;;  %v765_v25 = vld [vmem:[#allocation2 + $0x38] sm:$0xff]  }
  0x12   :  { %v764_v24 = vld [vmem:[#allocation2 + $0x40] sm:$0xff]   ;;  %v766_v26 = vld [vmem:[#allocation2 + $0x30] sm:$0xff]   ;;  %v767_v27 = vld [vmem:[#allocation2 + $0x88] sm:$0xff]  }
  0x13   :  { %678 = vmatmul.mubr.msk.bf16.vlgmr.msra.gmra.mxu0 %vm59_vm1, %v43_v4  ;;  %v768_v28 = vld [vmem:[#allocation2 + $0x80] sm:$0xff]   ;;  %v769_v29 = vld [vmem:[#allocation2 + $0x78] sm:$0xff]   ;;  %v770_v40 = vld [vmem:[#allocation2 + $0x70] sm:$0xff]  }
  0x14   :  { %709 = vmatprep.mubr.msk.bf16.mxu0 %vm813_vm0, %v812_v0  ;;  %684 = vmatpush3.bf16.msra.mxu1 %v756_v6  ;;  %v611_v30 = vld [vmem:[%s977_s4] ss:$0 sm:$0xff]  ;;  %v771_v41 = vld [vmem:[#allocation2 + $0x68] sm:$0xff]   ;;  %v775_v45 = vld [vmem:[%s978_s5 + $0x18] sm:$0xff]  }
  0x15   :  { %685 = vmatprep.subr.bf16.mxu1 %v812_v0  ;;  %698 = vmatpush3.bf16.msra.mxu0 %v761_v11  ;;  %v772_v42 = vld [vmem:[#allocation2 + $0x60] sm:$0xff]   ;;  %v773_v43 = vld [vmem:[%s978_s5 + $0x28] sm:$0xff]   ;;  %v776_v56 = vld [vmem:[%s978_s5 + $0x10] sm:$0xff]  }
  0x16   :  { %699 = vmatprep.subr.bf16.mxu0 %v812_v0  ;;  %v774_v44 = vld [vmem:[%s978_s5 + $0x20] sm:$0xff]   ;;  %v777_v57 = vld [vmem:[%s978_s5 + $0x8] sm:$0xff]  }
  0x17   :  { %v620_v46 = vld [vmem:[%s977_s4 + $0x1] ss:$0 sm:$0xff]  ;;  %v629_v59 = vld [vmem:[%s977_s4 + $0x2] ss:$0 sm:$0xff]  ;;  %s815_s4 = smov 112  }
  0x18   :  { %686 = vmatpush3.bf16.msra.mxu1 %v757_v7  ;;  %v778_v58 = vld [vmem:[%s978_s5] sm:$0xff]   ;;  %s814_s5 = smov 96  }
  0x19   :  { %687 = vmatprep.subr.bf16.mxu1 %v812_v0  ;;  %700 = vmatpush3.bf16.msra.mxu0 %v762_v12 }
  0x1a   :  { %701 = vmatprep.subr.bf16.mxu0 %v812_v0 }
  0x1c   :  { %688 = vmatpush3.bf16.msra.mxu1 %v758_v8 }
  0x1d   :  { %689 = vmatprep.subr.bf16.mxu1 %v812_v0  ;;  %702 = vmatpush3.bf16.msra.mxu0 %v763_v13 }
  0x1e   :  { %703 = vmatprep.subr.bf16.mxu0 %v812_v0 }
  0x20   :  { %690 = vmatpush3.bf16.msra.mxu1 %v759_v9 }
  0x21   :  { %691 = vmatprep.subr.bf16.mxu1 %v812_v0  ;;  %704 = vmatpush3.bf16.msra.mxu0 %v764_v24 }
  0x22   :  { %705 = vmatprep.subr.bf16.mxu0 %v812_v0 }
  0x24   :  { %692 = vmatpush3.bf16.msra.mxu1 %v760_v10 }
  0x25   :  { %713 = vmatprep.subr.bf16.mxu1 %v812_v0  ;;  %706 = vmatpush3.bf16.msra.mxu0 %v765_v25 }
  0x26   :  { %707 = vmatprep.subr.bf16.mxu0 %v812_v0 }
  0x29   :  { %708 = vmatpush3.bf16.msra.mxu0 %v766_v26 }
  0x2a   :  { %729 = vmatprep.subr.bf16.mxu0 %v812_v0 }
  0xd3   :  { %v97_v15 = vpop.f32.mrf.mxu0 }
  0xd4   :  { %v98_v17 = vadd.f32 %v608_v14, %v97_v15 }
  0xd5   :  { %v679_v16 = vpop.f32.mrf.mxu0 }
  0xd6   :  { %v104_v21 = vmax.f32 %v98_v17, 0.0 }
  0xd7   :  { %v100_v18 = vpop.f32.mrf.mxu0 }
  0xd8   :  { %v101_v19 = vadd.f32 %v608_v14, %v100_v18 }
  0xd9   :  { %v680_v20 = vpop.f32.mrf.mxu0 }
  0xda   :  { %v105_v22 = vmax.f32 %v101_v19, 0.0 }
  0xdc   :  { %v106_v23 = vpack.c.bf16 %v105_v22, %v104_v21 }
  0xde   :  { %694 = vmatmul.mubr.msk.bf16.vlgmr.msra.gmra.mxu1 %vm162_vm2, %v106_v23 }
  0xdf   :  { %725 = vmatprep.mubr.msk.bf16.mxu1 %vm813_vm0, %v812_v0  ;;  %714 = vmatpush3.bf16.msra.mxu1 %v767_v27 }
  0xe0   :  { %715 = vmatprep.subr.bf16.mxu1 %v812_v0 }
  0xe3   :  { %716 = vmatpush3.bf16.msra.mxu1 %v768_v28 }
  0xe4   :  { %717 = vmatprep.subr.bf16.mxu1 %v812_v0 }
  0xe7   :  { %718 = vmatpush3.bf16.msra.mxu1 %v769_v29 }
  0xe8   :  { %719 = vmatprep.subr.bf16.mxu1 %v812_v0 }
  0xeb   :  { %720 = vmatpush3.bf16.msra.mxu1 %v770_v40 }
  0xec   :  { %721 = vmatprep.subr.bf16.mxu1 %v812_v0 }
  0xef   :  { %722 = vmatpush3.bf16.msra.mxu1 %v771_v41 }
  0xf0   :  { %723 = vmatprep.subr.bf16.mxu1 %v812_v0 }
  0xf3   :  { %724 = vmatpush3.bf16.msra.mxu1 %v772_v42 }
 0x19e   :  { %v200_v31 = vpop.f32.mrf.mxu1 }
 0x19f   :  { %v201_v33 = vadd.f32 %v611_v30, %v200_v31 }
 0x1a0   :  { %v695_v32 = vpop.f32.mrf.mxu1 }
 0x1a1   :  { %v207_v37 = vmax.f32 %v201_v33, 0.0 }
 0x1a2   :  { %v203_v34 = vpop.f32.mrf.mxu1 }
 0x1a3   :  { %v204_v35 = vadd.f32 %v611_v30, %v203_v34 }
 0x1a4   :  { %v696_v36 = vpop.f32.mrf.mxu1 }
 0x1a5   :  { %v208_v38 = vmax.f32 %v204_v35, 0.0 }
 0x1a7   :  { %v209_v39 = vpack.c.bf16 %v208_v38, %v207_v37 }
 0x1a9   :  { %710 = vmatmul.mubr.msk.bf16.vlgmr.msra.gmra.mxu0 %vm162_vm2, %v209_v39 }
 0x1aa   :  { %741 = vmatprep.mubr.msk.bf16.mxu0 %vm813_vm0, %v812_v0  ;;  %730 = vmatpush3.bf16.msra.mxu0 %v773_v43 }
 0x1ab   :  { %731 = vmatprep.subr.bf16.mxu0 %v812_v0 }
 0x1ae   :  { %732 = vmatpush3.bf16.msra.mxu0 %v774_v44 }
 0x1af   :  { %733 = vmatprep.subr.bf16.mxu0 %v812_v0 }
 0x1b2   :  { %734 = vmatpush3.bf16.msra.mxu0 %v775_v45 }
 0x1b3   :  { %735 = vmatprep.subr.bf16.mxu0 %v812_v0 }
 0x1b6   :  { %736 = vmatpush3.bf16.msra.mxu0 %v776_v56 }
 0x1b7   :  { %737 = vmatprep.subr.bf16.mxu0 %v812_v0 }
 0x1ba   :  { %738 = vmatpush3.bf16.msra.mxu0 %v777_v57 }
 0x1bb   :  { %739 = vmatprep.subr.bf16.mxu0 %v812_v0  ;;  %v637_v0 = vld [vmem:[%s979_s6] ss:$0 sm:$0xff]  ;;  %s816_s6 = smov 16  }
 0x1be   :  { %740 = vmatpush3.bf16.msra.mxu0 %v778_v58 }
 0x269   :  { %v304_v47 = vpop.f32.mrf.mxu0 }
 0x26a   :  { %v305_v49 = vadd.f32 %v620_v46, %v304_v47 }
 0x26b   :  { %v711_v48 = vpop.f32.mrf.mxu0 }
 0x26c   :  { %v311_v53 = vmax.f32 %v305_v49, 0.0 }
 0x26d   :  { %v307_v50 = vpop.f32.mrf.mxu0 }
 0x26e   :  { %v308_v51 = vadd.f32 %v620_v46, %v307_v50 }
 0x26f   :  { %v712_v52 = vpop.f32.mrf.mxu0 }
 0x270   :  { %v312_v54 = vmax.f32 %v308_v51, 0.0 }
 0x272   :  { %v313_v55 = vpack.c.bf16 %v312_v54, %v311_v53 }
 0x274   :  { %726 = vmatmul.mubr.msk.bf16.vlgmr.msra.gmra.mxu1 %vm162_vm2, %v313_v55 }
 0x334   :  { %v408_v60 = vpop.f32.mrf.mxu1 }
 0x335   :  { %v409_v62 = vadd.f32 %v629_v59, %v408_v60 }
 0x336   :  { %v727_v61 = vpop.f32.mrf.mxu1 }
 0x337   :  { %v415_v3 = vmax.f32 %v409_v62, 0.0 }
 0x338   :  { %v411_v63 = vpop.f32.mrf.mxu1 }
 0x339   :  { %v412_v1 = vadd.f32 %v629_v59, %v411_v63 }
 0x33a   :  { %v728_v2 = vpop.f32.mrf.mxu1 }
 0x33b   :  { %v416_v4 = vmax.f32 %v412_v1, 0.0 }
 0x33d   :  { %v417_v5 = vpack.c.bf16 %v416_v4, %v415_v3 }
 0x33f   :  { %742 = vmatmul.mubr.msk.bf16.vlgmr.msra.gmra.mxu0 %vm162_vm2, %v417_v5 }
 0x3ff   :  { %v510_v6 = vpop.f32.mrf.mxu0 }
 0x400   :  { %v511_v7 = vadd.f32 %v637_v0, %v510_v6 }
 0x401   :  { %v743_v8 = vpop.f32.mrf.mxu0 }
 0x402   :  { %527 = vrot.lane.b32.xlu1 %v511_v7, %s814_s5  ;;  %519 = vrot.lane.b32.xlu0 %v511_v7, %s815_s4 }
 0x403   :  { %v513_v9 = vpop.f32.mrf.mxu0 }
 0x404   :  { %v514_v10 = vadd.f32 %v637_v0, %v513_v9 }
 0x405   :  { %v744_v11 = vpop.f32.mrf.mxu0 }
 0x406   :  { %529 = vrot.lane.b32.xlu1 %v514_v10, %s814_s5  ;;  %521 = vrot.lane.b32.xlu0 %v514_v10, %s815_s4 }
 0x474   :  { %v528_v12 = vpop.permute.xlu1 %527  ;;  %v520_v13 = vpop.permute.xlu0 %519 }
 0x475   :  { %v525_v14 = vmax.f32 %v511_v7, %v520_v13 }
 0x477   :  { %v533_v15 = vmax.f32 %v525_v14, %v528_v12 }
 0x478   :  { %v522_v16 = vpop.permute.xlu0 %521  ;;  %v530_v18 = vpop.permute.xlu1 %529 }
 0x479   :  { %v526_v17 = vmax.f32 %v514_v10, %v522_v16  ;;  %537 = vrot.lane.b32.xlu0 %v533_v15, %s816_s6 }
 0x47b   :  { %v534_v19 = vmax.f32 %v526_v17, %v530_v18 }
 0x47d   :  { %543 = vrot.lane.b32.xlu0 %v533_v15, %s817_s9  ;;  %539 = vrot.lane.b32.xlu1 %v534_v19, %s816_s6 }
 0x481   :  { %545 = vrot.lane.b32.xlu1 %v534_v19, %s817_s9 }
 0x4eb   :  { %v538_v20 = vpop.permute.xlu0 %537 }
 0x4ec   :  { %v549_v21 = vsel %vm59_vm1, %v533_v15, %v538_v20 }
 0x4ef   :  { %v540_v22 = vpop.permute.xlu1 %539  ;;  %v544_v23 = vpop.permute.xlu0 %543 }
 0x4f0   :  { %v552_v24 = vsel %vm551_vm3, %v549_v21, %v544_v23  ;;  %v550_v26 = vsel %vm59_vm1, %v534_v19, %v540_v22 }
 0x4f1   :  { %v554_v25 = vsub.f32 %v511_v7, %v552_v24 }
 0x4f3   :  { %v556_v27 = vmul.f32 1.442695, %v554_v25  ;;  %v546_v28 = vpop.permute.xlu1 %545 }
 0x4f4   :  { %v553_v29 = vsel %vm551_vm3, %v550_v26, %v546_v28 }
 0x4f5   :  { %779 = vpow2.f32 %v556_v27  ;;  %v555_v30 = vsub.f32 %v514_v10, %v553_v29 }
 0x4f7   :  { %v558_v31 = vmul.f32 1.442695, %v555_v30 }
 0x4f9   :  { %781 = vpow2.f32 %v558_v31 }
 0x502   :  { %v780_v32 = vpop.eup %779 }
 0x503   :  { %562 = vrot.lane.b32.xlu0 %v780_v32, %s815_s4 }
 0x506   :  { %v782_v33 = vpop.eup %781 }
 0x507   :  { %564 = vrot.lane.b32.xlu1 %v782_v33, %s815_s4  ;;  %570 = vrot.lane.b32.xlu0 %v780_v32, %s814_s5 }
 0x50b   :  { %572 = vrot.lane.b32.xlu1 %v782_v33, %s814_s5 }
 0x575   :  { %v563_v34 = vpop.permute.xlu0 %562 }
 0x576   :  { %v568_v35 = vadd.f32 %v780_v32, %v563_v34 }
 0x579   :  { %v565_v36 = vpop.permute.xlu1 %564  ;;  %v571_v37 = vpop.permute.xlu0 %570 }
 0x57a   :  { %v576_v38 = vadd.f32 %v571_v37, %v568_v35  ;;  %v569_v39 = vadd.f32 %v782_v33, %v565_v36 }
 0x57c   :  { %580 = vrot.lane.b32.xlu0 %v576_v38, %s816_s6 }
 0x57d   :  { %v573_v40 = vpop.permute.xlu1 %572 }
 0x57e   :  { %v577_v41 = vadd.f32 %v573_v40, %v569_v39 }
 0x580   :  { %582 = vrot.lane.b32.xlu1 %v577_v41, %s816_s6  ;;  %586 = vrot.lane.b32.xlu0 %v576_v38, %s817_s9 }
 0x584   :  { %588 = vrot.lane.b32.xlu1 %v577_v41, %s817_s9 }
 0x5ee   :  { %v581_v42 = vpop.permute.xlu0 %580 }
 0x5ef   :  { %v592_v43 = vsel %vm59_vm1, %v576_v38, %v581_v42 }
 0x5f2   :  { %v583_v44 = vpop.permute.xlu1 %582  ;;  %v587_v45 = vpop.permute.xlu0 %586 }
 0x5f3   :  { %v594_v46 = vsel %vm551_vm3, %v592_v43, %v587_v45  ;;  %v593_v47 = vsel %vm59_vm1, %v577_v41, %v583_v44 }
 0x5f4   :  { %783 = vrcp.f32 %v594_v46 }
 0x5f6   :  { %v589_v48 = vpop.permute.xlu1 %588 }
 0x5f7   :  { %v595_v49 = vsel %vm551_vm3, %v593_v47, %v589_v48 }
 0x5f8   :  { %785 = vrcp.f32 %v595_v49 }
 0x601   :  { %v784_v50 = vpop.eup %783 }
 0x602   :  { %v597_v51 = vmul.f32 %v784_v50, %v780_v32 }
 0x604   :  { %601 = vst.msk [vmem:[%s980_s7] sm:$0xff] %vm600_vm4, %v597_v51 }
 0x605   :  { %v786_v52 = vpop.eup %785 }
 0x606   :  { %v599_v53 = vmul.f32 %v786_v52, %v782_v33 }
 0x608   :  { %602 = vst.msk [vmem:[%s980_s7 + $0x8] sm:$0xff] %vm600_vm4, %v599_v53 }
 0x609   :  { %607 = vsyncpa [#allocation3], 1 }

</bundles_post_ra>
